<compile_context>
chip_gen: v7x
topology: tpu7x:2x2x1
jax: 0.10.0
libtpu: 0.0.40
codegen_flags: <defaults>
</compile_context>

<pallas_src>
import functools

import jax
import jax.numpy as jnp
from jax.experimental import pallas as pl
from jax.experimental.pallas import tpu as pltpu


def _round_up(v, m):
    return (v + m - 1) // m * m


def _largest_tile(padded_dim, max_tile, unit=128):
    """Largest multiple of `unit` <= max_tile that divides `padded_dim`.

    `padded_dim` must itself be a multiple of `unit` (so `unit` always works).
    """
    t = max(unit, (min(max_tile, padded_dim) // unit) * unit)
    while padded_dim % t:
        t -= unit
    return t


# ----------------------------------------------------------------------------
# Tiled matmul kernel:  y = x @ w + b ; optional ReLU.  f32 accumulation.
# ----------------------------------------------------------------------------
def _matmul_kernel(x_ref, w_ref, b_ref, o_ref, acc_ref, *, apply_relu):
    k = pl.program_id(2)

    @pl.when(k == 0)
    def _():
        acc_ref[...] = jnp.zeros_like(acc_ref)

    acc_ref[...] += jnp.dot(x_ref[...], w_ref[...],
                            preferred_element_type=jnp.float32)

    @pl.when(k == pl.num_programs(2) - 1)
    def _():
        y = acc_ref[...] + b_ref[...]          # bias in f32
        if apply_relu:
            y = jnp.maximum(y, 0.0)
        o_ref[...] = y.astype(o_ref.dtype)


def pallas_linear_padded(x, w, b, *, tm, apply_relu, out_dtype,
                         tn_max=1024, tk_max=2048):
    """x:(Mp,Kp) @ w:(Kp,Np) + b:(1,Np) -> (Mp,Np).  All dims pre-padded:
    Mp % tm == 0, Kp % 128 == 0, Np % 128 == 0 (weights padded once at init)."""
    Mp, Kp = x.shape
    Kp2, Np = w.shape
    assert Kp == Kp2 and Mp % tm == 0 and Kp % 128 == 0 and Np % 128 == 0

    tn = _largest_tile(Np, min(tn_max, Np))
    tk = _largest_tile(Kp, min(tk_max, Kp))
    # v7x has 2 TensorCores: make sure at least one "parallel" axis has >=2
    # tiles so megacore sharding has work for both cores.
    if Mp // tm == 1 and Np // tn == 1 and Np >= 256:
        tn = _largest_tile(Np, max(128, tn // 2))

    grid = (Mp // tm, Np // tn, Kp // tk)
    return pl.pallas_call(
        functools.partial(_matmul_kernel, apply_relu=apply_relu),
        out_shape=jax.ShapeDtypeStruct((Mp, Np), out_dtype),
        grid_spec=pltpu.PrefetchScalarGridSpec(
            num_scalar_prefetch=0,
            grid=grid,
            in_specs=[
                pl.BlockSpec((tm, tk), lambda i, j, k: (i, k)),
                pl.BlockSpec((tk, tn), lambda i, j, k: (k, j)),
                pl.BlockSpec((1, tn), lambda i, j, k: (0, j)),
            ],
            out_specs=pl.BlockSpec((tm, tn), lambda i, j, k: (i, j)),
            scratch_shapes=[pltpu.VMEM((tm, tn), jnp.float32)],
        ),
        compiler_params=pltpu.CompilerParams(
            dimension_semantics=("parallel", "parallel", "arbitrary"),
            vmem_limit_bytes=32 * 1024 * 1024),
    )(x, w, b)


# ----------------------------------------------------------------------------
# Fused conv stage: (optional 1x1 conv + ReLU) -> (2x2 stride-2 conv + ReLU)
# expressed as one big matmul over M = N*Ho*Wo rows.
# ----------------------------------------------------------------------------
def _conv_fused_kernel(*refs, has_reduce):
    if has_reduce:
        p_ref, w1_ref, b1_ref, w2_ref, b2_ref, o_ref = refs
        # p_ref: (4, tm, Cin) -- the four non-overlapping 2x2 patch positions.
        chunks = []
        for p in range(4):
            t = jnp.dot(p_ref[p], w1_ref[...],
                        preferred_element_type=jnp.float32)
            chunks.append(jnp.maximum(t + b1_ref[...], 0.0)
                          .astype(w2_ref.dtype))
        xcat = jnp.concatenate(chunks, axis=-1)        # (tm, 4*Cc)
    else:
        p_ref, w2_ref, b2_ref, o_ref = refs
        xcat = p_ref[...]                              # (tm, 4*Cin)

    # Single MXU pass over K = 4*Cc (or 4*Cin) against the flattened 2x2 weight.
    y = jnp.dot(xcat, w2_ref[...], preferred_element_type=jnp.float32)
    o_ref[...] = jnp.maximum(y + b2_ref[...], 0.0).astype(o_ref.dtype)


def pallas_conv_stage(pat, w1, b1, w2_flat, b2, *, has_reduce, out_dtype,
                      tm_max=512):
    """pat: (4, M, Cin) if has_reduce else (M, 4*Cin), rows are all (n, oh, ow).
    w1: (Cin, Cc) or None.  w2_flat: (4*Cin_conv, Cc), rows ordered (kh,kw,ci).
    Returns (M, Cc)."""
    if has_reduce:
        _, M, Cin = pat.shape
    else:
        M, lanes = pat.shape
    Cc = w2_flat.shape[-1]

    tm = min(tm_max, _round_up(M, 16))
    Mp = _round_up(M, tm)
    if Mp != M:
        if has_reduce:
            pat = jnp.pad(pat, ((0, 0), (0, Mp - M), (0, 0)))
        else:
            pat = jnp.pad(pat, ((0, Mp - M), (0, 0)))

    if has_reduce:
        in_specs = [
            pl.BlockSpec((4, tm, Cin), lambda i: (0, i, 0)),
            pl.BlockSpec(w1.shape, lambda i: (0, 0)),        # resident weight
            pl.BlockSpec(b1.shape, lambda i: (0, 0)),
            pl.BlockSpec(w2_flat.shape, lambda i: (0, 0)),
            pl.BlockSpec(b2.shape, lambda i: (0, 0)),
        ]
        args = (pat, w1, b1, w2_flat, b2)
    else:
        in_specs = [
            pl.BlockSpec((tm, lanes), lambda i: (i, 0)),
            pl.BlockSpec(w2_flat.shape, lambda i: (0, 0)),
            pl.BlockSpec(b2.shape, lambda i: (0, 0)),
        ]
        args = (pat, w2_flat, b2)

    out = pl.pallas_call(
        functools.partial(_conv_fused_kernel, has_reduce=has_reduce),
        out_shape=jax.ShapeDtypeStruct((Mp, Cc), out_dtype),
        grid_spec=pltpu.PrefetchScalarGridSpec(
            num_scalar_prefetch=0,
            grid=(Mp // tm,),
            in_specs=in_specs,
            out_specs=pl.BlockSpec((tm, Cc), lambda i: (i, 0)),
        ),
        compiler_params=pltpu.CompilerParams(
            dimension_semantics=("parallel",)),
    )(*args)
    if Mp != M:
        out = out[:M]
    return out


# ----------------------------------------------------------------------------
# CoarseMaskHead parameters + forward
# ----------------------------------------------------------------------------
class CoarseMaskHeadPallas:
    FC_TM_MAX = 256     # MXU has 256 rows on v6e/v7x

    def __init__(self, input_channels, conv_dim, input_h, input_w,
                 num_classes=35, fc_dim=1024, num_fc=2,
                 output_side_resolution=7, compute_dtype=jnp.bfloat16,
                 key=None):
        assert input_h % 2 == 0 and input_w % 2 == 0
        self.input_channels = input_channels
        self.conv_dim = conv_dim
        self.input_h = input_h
        self.input_w = input_w
        self.num_classes = num_classes
        self.fc_dim = fc_dim
        self.num_fc = num_fc
        self.output_side_resolution = output_side_resolution
        self.compute_dtype = compute_dtype
        self.has_reduce_channel = input_channels > conv_dim

        if key is None:
            key = jax.random.PRNGKey(0)
        keys = jax.random.split(key, 3 + num_fc)
        cd = compute_dtype

        def nrm(k, shape, std):
            return std * jax.random.normal(k, shape, dtype=jnp.float32)

        # 1x1 channel-reduction conv (torch weight (out,in,1,1)); msra, bias 0.
        if self.has_reduce_channel:
            w1 = nrm(keys[0], (conv_dim, input_channels, 1, 1),
                     (2.0 / input_channels) ** 0.5)
            self.w1_mat = jnp.transpose(
                w1.reshape(conv_dim, input_channels)).astype(cd)   # (Cin, Cc)
            self.b1_row = jnp.zeros((1, conv_dim), jnp.float32)
            cin_conv = conv_dim
        else:
            self.w1_mat = None
            self.b1_row = None
            cin_conv = input_channels

        # 2x2 stride-2 conv (torch weight (out,in,2,2)) -> flat (4*cin, Cc),
        # rows ordered (kh, kw, ci) so a single MXU pass does the whole conv.
        w2 = nrm(keys[1], (conv_dim, cin_conv, 2, 2),
                 (2.0 / (cin_conv * 4)) ** 0.5)
        self.w2_flat = (jnp.transpose(w2, (2, 3, 1, 0))
                        .reshape(4 * cin_conv, conv_dim).astype(cd))
        self.b2_row = jnp.zeros((1, conv_dim), jnp.float32)

        Ho, Wo = input_h // 2, input_w // 2
        D = conv_dim * Ho * Wo

        # Linear layers: num_fc hidden FCs (c2_xavier_fill, bias 0) + predictor
        # (std=0.001, bias 0).  fc1 weight rows are permuted so the NHWC
        # flatten from the conv kernel reproduces torch's NCHW flatten, and all
        # weights/biases are padded to (128-aligned) tile multiples ONCE here.
        dims, in_dim = [], D
        for _ in range(num_fc):
            dims.append((in_dim, fc_dim))
            in_dim = fc_dim
        out_dim = num_classes * output_side_resolution * output_side_resolution
        dims.append((fc_dim, out_dim))

        self.lin_layers = []   # (w_pad (Kp,Np) bf16, b_pad (1,Np) f32, N_orig)
        self.ref_ws, self.ref_bs = [], []   # unpadded, NCHW-flatten fc1 order
        for i, (kdim, ndim) in enumerate(dims):
            is_pred = (i == len(dims) - 1)
            std = 0.001 if is_pred else (2.0 / (kdim + ndim)) ** 0.5
            wt = nrm(keys[2 + i], (ndim, kdim), std)          # torch (out, in)
            w_mat = jnp.transpose(wt).astype(cd)              # (K, N)
            b = jnp.zeros((ndim,), jnp.float32)
            self.ref_ws.append(w_mat)
            self.ref_bs.append(b)

            if i == 0:
                # NCHW-flatten (c,h,w) row order -> NHWC-flatten (h,w,c) order.
                w_kernel = (w_mat.reshape(conv_dim, Ho, Wo, ndim)
                            .transpose(1, 2, 0, 3).reshape(kdim, ndim))
            else:
                w_kernel = w_mat
            Kp, Np = _round_up(kdim, 128), _round_up(ndim, 128)
            if (Kp, Np) != (kdim, ndim):
                w_kernel = jnp.pad(w_kernel, ((0, Kp - kdim), (0, Np - ndim)))
            b_pad = b.reshape(1, ndim)
            if Np != ndim:
                b_pad = jnp.pad(b_pad, ((0, 0), (0, Np - ndim)))
            self.lin_layers.append((w_kernel, b_pad, ndim))

    # ------------------------------------------------------------------
    def forward(self, x):
        """x: (N, input_channels, input_h, input_w) float32 (NCHW, like torch)."""
        N = x.shape[0]
        C, H, W = self.input_channels, self.input_h, self.input_w
        Cc = self.conv_dim
        Ho, Wo = H // 2, W // 2
        cd = self.compute_dtype
        M_rows = N * Ho * Wo

        # Cast to compute dtype FIRST (halves the layout-pass HBM traffic),
        # then one fused reshape/transpose builds the 2x2 patch slabs directly
        # (replaces the NCHW->NHWC transpose -- same byte count, no extra pass).
        xb = x.reshape(N, C, H, W).astype(cd).reshape(N, C, Ho, 2, Wo, 2)
        if self.has_reduce_channel:
            # (kh, kw, n, oh, ow, c) -> (4, M, Cin)
            pat = (jnp.transpose(xb, (3, 5, 0, 2, 4, 1))
                   .reshape(4, M_rows, C))
        else:
            # (n, oh, ow, kh, kw, c) -> (M, 4*Cin)
            pat = (jnp.transpose(xb, (0, 2, 4, 3, 5, 1))
                   .reshape(M_rows, 4 * C))

        conv_out = pallas_conv_stage(
            pat, self.w1_mat, self.b1_row, self.w2_flat, self.b2_row,
            has_reduce=self.has_reduce_channel, out_dtype=cd)   # (M_rows, Cc)

        # NHWC flatten; fc1 weight rows were permuted at init to match torch's
        # NCHW flatten, so no activation transpose is needed.
        feat = conv_out.reshape(N, Ho * Wo * Cc)

        # FC chain: pad rows/cols once, keep padding through the chain
        # (padded columns stay exactly zero), slice once at the end.
        M = N
        tm = min(self.FC_TM_MAX, _round_up(M, 16))
        Mp = _round_up(M, tm)
        Kp0 = self.lin_layers[0][0].shape[0]
        pad_r, pad_c = Mp - M, Kp0 - feat.shape[1]
        h = feat
        if pad_r or pad_c:
            h = jnp.pad(h, ((0, pad_r), (0, pad_c)))

        n_lin = len(self.lin_layers)
        for idx, (w_pad, b_pad, _) in enumerate(self.lin_layers):
            is_last = idx == n_lin - 1
            h = pallas_linear_padded(
                h, w_pad, b_pad, tm=tm, apply_relu=not is_last,
                out_dtype=jnp.float32 if is_last else cd)

        out_dim = self.lin_layers[-1][2]
        out = h[:M, :out_dim]
        R = self.output_side_resolution
        return out.reshape(N, self.num_classes, R, R)

    # Pure-JAX reference with torch NCHW-flatten semantics (same bf16 params),
    # validating the Pallas path including the fc1 row permutation.
    def forward_ref(self, x):
        N = x.shape[0]
        C, H, W = self.input_channels, self.input_h, self.input_w
        Cc = self.conv_dim
        Ho, Wo = H // 2, W // 2
        cd = self.compute_dtype
        x_nhwc = jnp.transpose(x.reshape(N, C, H, W), (0, 2, 3, 1)).astype(cd)
        if self.has_reduce_channel:
            rows = jnp.dot(x_nhwc.reshape(N * H * W, C), self.w1_mat,
                           preferred_element_type=jnp.float32) + self.b1_row
            x_nhwc = jnp.maximum(rows, 0.0).astype(cd).reshape(N, H, W, Cc)
        Ci = x_nhwc.shape[-1]
        patches = (x_nhwc.reshape(N, Ho, 2, Wo, 2, Ci)
                   .transpose(0, 1, 3, 2, 4, 5)
                   .reshape(N * Ho * Wo, 4 * Ci))
        rows = jnp.dot(patches, self.w2_flat,
                       preferred_element_type=jnp.float32) + self.b2_row
        xo = jnp.maximum(rows, 0.0).astype(cd).reshape(N, Ho, Wo, Cc)
        feat = jnp.transpose(xo, (0, 3, 1, 2)).reshape(N, Cc * Ho * Wo)  # NCHW
        for wf, bf in zip(self.ref_ws[:-1], self.ref_bs[:-1]):
            feat = jnp.maximum(
                jnp.dot(feat, wf, preferred_element_type=jnp.float32) + bf,
                0.0).astype(cd)
        out = jnp.dot(feat, self.ref_ws[-1],
                      preferred_element_type=jnp.float32) + self.ref_bs[-1]
        R = self.output_side_resolution
        return out.reshape(N, self.num_classes, R, R)


if __name__ == "__main__":
    key = jax.random.PRNGKey(0)
    k_p1, k_p2, k_x1, k_x2 = jax.random.split(key, 4)

    # 1) Head with channel reduction (input_channels > conv_dim).
    N, C_IN, CONV_DIM, H, W = 2, 8, 4, 16, 16
    head = CoarseMaskHeadPallas(
        input_channels=C_IN, conv_dim=CONV_DIM, input_h=H, input_w=W,
        num_classes=4, fc_dim=32, num_fc=2, output_side_resolution=7,
        key=k_p1)
    x = jax.random.normal(k_x1, (N, C_IN, H, W), dtype=jnp.float32)
    out = head.forward(x)
    jax.block_until_ready(out)
    ref = head.forward_ref(x)
    assert out.shape == (N, 4, 7, 7), out.shape
    assert jnp.allclose(out, ref, rtol=2e-2, atol=1e-3), \
        "mismatch vs reference (reduce path)"

    # 2) Head without channel reduction (input_channels <= conv_dim).
    head2 = CoarseMaskHeadPallas(
        input_channels=4, conv_dim=8, input_h=16, input_w=16,
        num_classes=3, fc_dim=32, num_fc=2, output_side_resolution=7,
        key=k_p2)
    x2 = jax.random.normal(k_x2, (2, 4, 16, 16), dtype=jnp.float32)
    out2 = head2.forward(x2)
    jax.block_until_ready(out2)
    ref2 = head2.forward_ref(x2)
    assert out2.shape == (2, 3, 7, 7), out2.shape
    assert jnp.allclose(out2, ref2, rtol=2e-2, atol=1e-3), \
        "mismatch vs reference (no-reduce path)"

    print("KERNEL_OK")
</pallas_src>

<mosaic_0001>
module attributes {stable_mosaic.version = 11 : i64} {
  func.func @_conv_fused_kernel(%arg0: i32, %arg1: memref<4x128x8xbf16, #tpu.memory_space<vmem>>, %arg2: memref<8x4xbf16, #tpu.memory_space<vmem>>, %arg3: memref<1x4xf32, #tpu.memory_space<vmem>>, %arg4: memref<16x4xbf16, #tpu.memory_space<vmem>>, %arg5: memref<1x4xf32, #tpu.memory_space<vmem>>, %arg6: memref<128x4xbf16, #tpu.memory_space<vmem>>) attributes {dimension_semantics = [#tpu.dimension_semantics<parallel>], iteration_bounds = array<i64: 1>, scalar_prefetch = 0 : i64, scratch_operands = 0 : i64, tpu.core_type = #tpu.core_type<tc>, window_params = [{transform_indices = @transform_0, window_bounds = array<i64: 4, 128, 8>}, {pipeline_mode = #tpu.pipeline_mode<synchronous>, transform_indices = @transform_1, window_bounds = array<i64: 8, 4>}, {pipeline_mode = #tpu.pipeline_mode<synchronous>, transform_indices = @transform_2, window_bounds = array<i64: 1, 4>}, {pipeline_mode = #tpu.pipeline_mode<synchronous>, transform_indices = @transform_3, window_bounds = array<i64: 16, 4>}, {pipeline_mode = #tpu.pipeline_mode<synchronous>, transform_indices = @transform_4, window_bounds = array<i64: 1, 4>}, {transform_indices = @transform_5, window_bounds = array<i64: 128, 4>}]} {
    %c0 = arith.constant 0 : index
    %c0_0 = arith.constant 0 : index
    %c0_1 = arith.constant 0 : index
    %0 = vector.load %arg1[%c0, %c0_0, %c0_1] : memref<4x128x8xbf16, #tpu.memory_space<vmem>>, vector<1x128x8xbf16>
    %1 = vector.shape_cast %0 : vector<1x128x8xbf16> to vector<128x8xbf16>
    %c0_2 = arith.constant 0 : index
    %c0_3 = arith.constant 0 : index
    %2 = vector.load %arg2[%c0_2, %c0_3] : memref<8x4xbf16, #tpu.memory_space<vmem>>, vector<8x4xbf16>
    %cst = arith.constant dense<0.000000e+00> : vector<128x4xf32>
    %3 = tpu.matmul %1, %2, %cst {dimension_numbers = #tpu.dot_dimension_numbers<[1], [0], [0], [1], [0, 0, 1, 1], [], []>} : vector<128x8xbf16>, vector<8x4xbf16>, vector<128x4xf32> -> vector<128x4xf32>
    %c0_4 = arith.constant 0 : index
    %c0_5 = arith.constant 0 : index
    %4 = vector.load %arg3[%c0_4, %c0_5] : memref<1x4xf32, #tpu.memory_space<vmem>>, vector<1x4xf32>
    %5 = vector.broadcast %4 : vector<1x4xf32> to vector<128x4xf32>
    %6 = arith.addf %3, %5 : vector<128x4xf32>
    %cst_6 = arith.constant 0.000000e+00 : f32
    %7 = vector.broadcast %cst_6 : f32 to vector<128x4xf32>
    %8 = arith.maximumf %6, %7 : vector<128x4xf32>
    %9 = arith.truncf %8 : vector<128x4xf32> to vector<128x4xbf16>
    %c1 = arith.constant 1 : index
    %c0_7 = arith.constant 0 : index
    %c0_8 = arith.constant 0 : index
    %10 = vector.load %arg1[%c1, %c0_7, %c0_8] : memref<4x128x8xbf16, #tpu.memory_space<vmem>>, vector<1x128x8xbf16>
    %11 = vector.shape_cast %10 : vector<1x128x8xbf16> to vector<128x8xbf16>
    %c0_9 = arith.constant 0 : index
    %c0_10 = arith.constant 0 : index
    %12 = vector.load %arg2[%c0_9, %c0_10] : memref<8x4xbf16, #tpu.memory_space<vmem>>, vector<8x4xbf16>
    %cst_11 = arith.constant dense<0.000000e+00> : vector<128x4xf32>
    %13 = tpu.matmul %11, %12, %cst_11 {dimension_numbers = #tpu.dot_dimension_numbers<[1], [0], [0], [1], [0, 0, 1, 1], [], []>} : vector<128x8xbf16>, vector<8x4xbf16>, vector<128x4xf32> -> vector<128x4xf32>
    %c0_12 = arith.constant 0 : index
    %c0_13 = arith.constant 0 : index
    %14 = vector.load %arg3[%c0_12, %c0_13] : memref<1x4xf32, #tpu.memory_space<vmem>>, vector<1x4xf32>
    %15 = vector.broadcast %14 : vector<1x4xf32> to vector<128x4xf32>
    %16 = arith.addf %13, %15 : vector<128x4xf32>
    %cst_14 = arith.constant 0.000000e+00 : f32
    %17 = vector.broadcast %cst_14 : f32 to vector<128x4xf32>
    %18 = arith.maximumf %16, %17 : vector<128x4xf32>
    %19 = arith.truncf %18 : vector<128x4xf32> to vector<128x4xbf16>
    %c2 = arith.constant 2 : index
    %c0_15 = arith.constant 0 : index
    %c0_16 = arith.constant 0 : index
    %20 = vector.load %arg1[%c2, %c0_15, %c0_16] : memref<4x128x8xbf16, #tpu.memory_space<vmem>>, vector<1x128x8xbf16>
    %21 = vector.shape_cast %20 : vector<1x128x8xbf16> to vector<128x8xbf16>
    %c0_17 = arith.constant 0 : index
    %c0_18 = arith.constant 0 : index
    %22 = vector.load %arg2[%c0_17, %c0_18] : memref<8x4xbf16, #tpu.memory_space<vmem>>, vector<8x4xbf16>
    %cst_19 = arith.constant dense<0.000000e+00> : vector<128x4xf32>
    %23 = tpu.matmul %21, %22, %cst_19 {dimension_numbers = #tpu.dot_dimension_numbers<[1], [0], [0], [1], [0, 0, 1, 1], [], []>} : vector<128x8xbf16>, vector<8x4xbf16>, vector<128x4xf32> -> vector<128x4xf32>
    %c0_20 = arith.constant 0 : index
    %c0_21 = arith.constant 0 : index
    %24 = vector.load %arg3[%c0_20, %c0_21] : memref<1x4xf32, #tpu.memory_space<vmem>>, vector<1x4xf32>
    %25 = vector.broadcast %24 : vector<1x4xf32> to vector<128x4xf32>
    %26 = arith.addf %23, %25 : vector<128x4xf32>
    %cst_22 = arith.constant 0.000000e+00 : f32
    %27 = vector.broadcast %cst_22 : f32 to vector<128x4xf32>
    %28 = arith.maximumf %26, %27 : vector<128x4xf32>
    %29 = arith.truncf %28 : vector<128x4xf32> to vector<128x4xbf16>
    %c3 = arith.constant 3 : index
    %c0_23 = arith.constant 0 : index
    %c0_24 = arith.constant 0 : index
    %30 = vector.load %arg1[%c3, %c0_23, %c0_24] : memref<4x128x8xbf16, #tpu.memory_space<vmem>>, vector<1x128x8xbf16>
    %31 = vector.shape_cast %30 : vector<1x128x8xbf16> to vector<128x8xbf16>
    %c0_25 = arith.constant 0 : index
    %c0_26 = arith.constant 0 : index
    %32 = vector.load %arg2[%c0_25, %c0_26] : memref<8x4xbf16, #tpu.memory_space<vmem>>, vector<8x4xbf16>
    %cst_27 = arith.constant dense<0.000000e+00> : vector<128x4xf32>
    %33 = tpu.matmul %31, %32, %cst_27 {dimension_numbers = #tpu.dot_dimension_numbers<[1], [0], [0], [1], [0, 0, 1, 1], [], []>} : vector<128x8xbf16>, vector<8x4xbf16>, vector<128x4xf32> -> vector<128x4xf32>
    %c0_28 = arith.constant 0 : index
    %c0_29 = arith.constant 0 : index
    %34 = vector.load %arg3[%c0_28, %c0_29] : memref<1x4xf32, #tpu.memory_space<vmem>>, vector<1x4xf32>
    %35 = vector.broadcast %34 : vector<1x4xf32> to vector<128x4xf32>
    %36 = arith.addf %33, %35 : vector<128x4xf32>
    %cst_30 = arith.constant 0.000000e+00 : f32
    %37 = vector.broadcast %cst_30 : f32 to vector<128x4xf32>
    %38 = arith.maximumf %36, %37 : vector<128x4xf32>
    %39 = arith.truncf %38 : vector<128x4xf32> to vector<128x4xbf16>
    %40 = tpu.concatenate %9, %19, %29, %39 in 1 : vector<128x4xbf16>, vector<128x4xbf16>, vector<128x4xbf16>, vector<128x4xbf16> -> vector<128x16xbf16>
    %c0_31 = arith.constant 0 : index
    %c0_32 = arith.constant 0 : index
    %41 = vector.load %arg4[%c0_31, %c0_32] : memref<16x4xbf16, #tpu.memory_space<vmem>>, vector<16x4xbf16>
    %cst_33 = arith.constant dense<0.000000e+00> : vector<128x4xf32>
    %42 = tpu.matmul %40, %41, %cst_33 {dimension_numbers = #tpu.dot_dimension_numbers<[1], [0], [0], [1], [0, 0, 1, 1], [], []>} : vector<128x16xbf16>, vector<16x4xbf16>, vector<128x4xf32> -> vector<128x4xf32>
    %c0_34 = arith.constant 0 : index
    %c0_35 = arith.constant 0 : index
    %43 = vector.load %arg5[%c0_34, %c0_35] : memref<1x4xf32, #tpu.memory_space<vmem>>, vector<1x4xf32>
    %44 = vector.broadcast %43 : vector<1x4xf32> to vector<128x4xf32>
    %45 = arith.addf %42, %44 : vector<128x4xf32>
    %cst_36 = arith.constant 0.000000e+00 : f32
    %46 = vector.broadcast %cst_36 : f32 to vector<128x4xf32>
    %47 = arith.maximumf %45, %46 : vector<128x4xf32>
    %48 = arith.truncf %47 : vector<128x4xf32> to vector<128x4xbf16>
    %c0_37 = arith.constant 0 : index
    %c0_38 = arith.constant 0 : index
    %49 = vector.load %arg6[%c0_37, %c0_38] : memref<128x4xbf16, #tpu.memory_space<vmem>>, vector<128x4xbf16>
    tpu.vector_store %arg6[%c0_37, %c0_38], %48 {strides = array<i32>} : memref<128x4xbf16, #tpu.memory_space<vmem>>, vector<128x4xbf16>,
    return
  }
  func.func @transform_0(%arg0: i32) -> (i32, i32, i32) {
    %c0_i32 = arith.constant 0 : i32
    %c0_i32_0 = arith.constant 0 : i32
    %c0_i32_1 = arith.constant 0 : i32
    return %c0_i32, %arg0, %c0_i32_0 : i32, i32, i32
  }
  func.func @transform_1(%arg0: i32) -> (i32, i32) {
    %c0_i32 = arith.constant 0 : i32
    %c0_i32_0 = arith.constant 0 : i32
    %c0_i32_1 = arith.constant 0 : i32
    return %c0_i32, %c0_i32_0 : i32, i32
  }
  func.func @transform_2(%arg0: i32) -> (i32, i32) {
    %c0_i32 = arith.constant 0 : i32
    %c0_i32_0 = arith.constant 0 : i32
    %c0_i32_1 = arith.constant 0 : i32
    return %c0_i32, %c0_i32_0 : i32, i32
  }
  func.func @transform_3(%arg0: i32) -> (i32, i32) {
    %c0_i32 = arith.constant 0 : i32
    %c0_i32_0 = arith.constant 0 : i32
    %c0_i32_1 = arith.constant 0 : i32
    return %c0_i32, %c0_i32_0 : i32, i32
  }
  func.func @transform_4(%arg0: i32) -> (i32, i32) {
    %c0_i32 = arith.constant 0 : i32
    %c0_i32_0 = arith.constant 0 : i32
    %c0_i32_1 = arith.constant 0 : i32
    return %c0_i32, %c0_i32_0 : i32, i32
  }
  func.func @transform_5(%arg0: i32) -> (i32, i32) {
    %c0_i32 = arith.constant 0 : i32
    %c0_i32_0 = arith.constant 0 : i32
    return %arg0, %c0_i32 : i32, i32
  }
}

</mosaic_0001>

<bundles_post_ra>
// kernel: tpu_custom_call.1
= control target key start
LH: loop header
LB: loop body
LE: loop exit
PB: predicated region body
PF: predicated region fallthrough
CT: control target
= control target key end

     0   :  { %vm110_vm0 = vcmask 1043456   ;;  %vm85_vm1 = vcmask 64512   ;;  %s1535_s8 = smov 4   ;;  %s1536_s9 = smov 12   ;;  %vm913_vm2 = vcmask 31744   ;;  %vm954_vm3 = vcmask 97280   ;;  %s1947_s1 = inlined_call_operand.vmem [shape: bf16[8,4], index: 1, kind: input, shape index: {}]   ;;  %s1948_s0 = inlined_call_operand.vmem [shape: bf16[4,128,8], index: 0, kind: input, shape index: {}]   ;;  %s1949_s2 = inlined_call_operand.vmem [shape: f32[1,4], index: 2, kind: input, shape index: {}]   ;;  %s1950_s3 = inlined_call_operand.vmem [shape: bf16[16,4], index: 3, kind: input, shape index: {}]   ;;  %s1951_s4 = inlined_call_operand.vmem [shape: f32[1,4], index: 4, kind: input, shape index: {}]   ;;  %s1952_s5 = inlined_call_operand.vmem [shape: bf16[128,4], index: 5, kind: output, shape index: {}]  }
   0x1   :  { %v37_v0 = vld [vmem:[%s1947_s1] sm:$0xf]  ;;  %v1503_v4 = vld [vmem:[%s1948_s0 + $0x8] sm:$0xff]   ;;  %v1505_v6 = vld [vmem:[%s1948_s0 + $0x10] sm:$0xff]   ;;  %vm986_vm4 = vcmask 130048   ;;  %vm1180_vm5 = vcmask 27648  }
   0x2   :  { %1493 = vmatprep.subr.msk.bf16.mxu0 %vm110_vm0, %v37_v0  ;;  %1494 = vmatprep.subr.msk.bf16.mxu1 %vm110_vm0, %v37_v0  ;;  %v112_v1 = vsel %vm110_vm0, %v37_v0, 0  ;;  %v1501_v2 = vld [vmem:[%s1948_s0] sm:$0xff]   ;;  %v1504_v5 = vld [vmem:[%s1948_s0 + $0x28] sm:$0xff]   ;;  %v1506_v7 = vld [vmem:[%s1948_s0 + $0x30] sm:$0xff]  }
   0x3   :  { %1402 = vmatpush3.bf16.msra.mxu0 %v112_v1  ;;  %1492 = vmatpush3.bf16.msra.mxu1 %v112_v1  ;;  %v1502_v3 = vld [vmem:[%s1948_s0 + $0x20] sm:$0xff]   ;;  %v1507_v8 = vld [vmem:[%s1948_s0 + $0x18] sm:$0xff]   ;;  %v1511_v12 = vld [vmem:[%s1948_s0 + $0x48] sm:$0xff]  }
   0x4   :  { %1403 = vmatprep.mubr.msk.bf16.mxu0 %vm85_vm1, %v1501_v2  ;;  %1495 = vmatprep.subr.msk.bf16.mxu1 %vm110_vm0, %v37_v0  ;;  %v1508_v9 = vld [vmem:[%s1948_s0 + $0x38] sm:$0xff]   ;;  %v1510_v10 = vld [vmem:[%s1948_s0 + $0x80] sm:$0xff]   ;;  %v1512_v13 = vld [vmem:[%s1948_s0 + $0x88] sm:$0xff]  }
   0x5   :  { %1411 = vmatprep.mubr.msk.bf16.mxu1 %vm85_vm1, %v1502_v3  ;;  %1496 = vmatprep.subr.msk.bf16.mxu0 %vm110_vm0, %v37_v0  ;;  %v1509_v11 = vld [vmem:[%s1948_s0 + $0x40] sm:$0xff]   ;;  %v1515_v14 = vld [vmem:[%s1948_s0 + $0x90] sm:$0xff]   ;;  %v1514_v16 = vld [vmem:[%s1948_s0 + $0x58] sm:$0xff]  }
   0x6   :  { %1404 = vmatmul.mubr.msk.bf16.vlgmr.msra.gmra.mrb[0].mxu0 %vm85_vm1, %v1503_v4  ;;  %1412 = vmatmul.mubr.msk.bf16.vlgmr.msra.gmra.mrb[0].mxu1 %vm85_vm1, %v1504_v5  ;;  %v1513_v15 = vld [vmem:[%s1948_s0 + $0x50] sm:$0xff]   ;;  %v1516_v17 = vld [vmem:[%s1948_s0 + $0x98] sm:$0xff]   ;;  %v1523_v18 = vld [vmem:[%s1948_s0 + $0xa0] sm:$0xff]  }
   0x7   :  { %1438 = vmatpush3.bf16.msra.mxu0 %v112_v1  ;;  %1420 = vmatpush3.bf16.msra.mxu1 %v112_v1  ;;  %v1517_v19 = vld [vmem:[%s1948_s0 + $0x60] sm:$0xff]   ;;  %v1524_v20 = vld [vmem:[%s1948_s0 + $0xa8] sm:$0xff]   ;;  %v1529_v22 = vld [vmem:[%s1948_s0 + $0xb0] sm:$0xff]  }
   0x8   :  { %1407 = vmatprep.mubr.msk.bf16.mxu0 %vm85_vm1, %v1505_v6  ;;  %1415 = vmatprep.mubr.msk.bf16.mxu1 %vm85_vm1, %v1506_v7  ;;  %v1518_v21 = vld [vmem:[%s1948_s0 + $0x68] sm:$0xff]   ;;  %v1519_v23 = vld [vmem:[%s1948_s0 + $0x70] sm:$0xff]   ;;  %v1530_v24 = vld [vmem:[%s1948_s0 + $0xb8] sm:$0xff]  }
   0x9   :  { %1497 = vmatprep.subr.msk.bf16.mxu1 %vm110_vm0, %v37_v0  ;;  %v1520_v25 = vld [vmem:[%s1948_s0 + $0x78] sm:$0xff]   ;;  %v1521_v26 = vld [vmem:[%s1948_s0 + $0xc0] sm:$0xff]   ;;  %v1522_v27 = vld [vmem:[%s1948_s0 + $0xc8] sm:$0xff]  }
   0xa   :  { %v1525_v28 = vld [vmem:[%s1948_s0 + $0xd0] sm:$0xff]   ;;  %v1526_v29 = vld [vmem:[%s1948_s0 + $0xd8] sm:$0xff]   ;;  %v1527_v30 = vld [vmem:[%s1948_s0 + $0xe0] sm:$0xff]  }
   0xb   :  { %v1528_v31 = vld [vmem:[%s1948_s0 + $0xe8] sm:$0xff]   ;;  %v1531_v32 = vld [vmem:[%s1948_s0 + $0xf0] sm:$0xff]   ;;  %v1532_v33 = vld [vmem:[%s1948_s0 + $0xf8] sm:$0xff]  }
   0xc   :  { %v1707_v34 = vld [vmem:[%s1949_s2] ss:$0 sm:$0xff] }
   0xe   :  { %1408 = vmatmul.mubr.msk.bf16.gmra.mrb[4].mxu0 %vm85_vm1, %v1507_v8  ;;  %1416 = vmatmul.mubr.msk.bf16.gmra.mrb[4].mxu1 %vm85_vm1, %v1508_v9 }
   0xf   :  { %1439 = vmatprep.mubr.msk.bf16.mxu0 %vm85_vm1, %v1510_v10  ;;  %1421 = vmatprep.mubr.msk.bf16.mxu1 %vm85_vm1, %v1509_v11 }
  0x16   :  { %1440 = vmatmul.mubr.msk.bf16.vlgmr.msra.gmra.mrb[8].mxu0 %vm85_vm1, %v1512_v13  ;;  %1422 = vmatmul.mubr.msk.bf16.vlgmr.msra.gmra.mrb[8].mxu1 %vm85_vm1, %v1511_v12 }
  0x17   :  { %1443 = vmatprep.mubr.msk.bf16.mxu0 %vm85_vm1, %v1515_v14  ;;  %1456 = vmatpush3.bf16.msra.mxu1 %v112_v1 }
  0x18   :  { %1425 = vmatprep.mubr.msk.bf16.mxu1 %vm85_vm1, %v1513_v15 }
  0x1e   :  { %1444 = vmatmul.mubr.msk.bf16.gmra.mrb[12].mxu0 %vm85_vm1, %v1516_v17  ;;  %1426 = vmatmul.mubr.msk.bf16.gmra.mrb[12].mxu1 %vm85_vm1, %v1514_v16 }
  0x1f   :  { %1447 = vmatprep.mubr.msk.bf16.mxu0 %vm85_vm1, %v1523_v18  ;;  %1429 = vmatprep.mubr.msk.bf16.mxu1 %vm85_vm1, %v1517_v19 }
  0x26   :  { %1448 = vmatmul.mubr.msk.bf16.gmra.mrb[16].mxu0 %vm85_vm1, %v1524_v20  ;;  %1430 = vmatmul.mubr.msk.bf16.gmra.mrb[16].mxu1 %vm85_vm1, %v1518_v21 }
  0x27   :  { %1451 = vmatprep.mubr.msk.bf16.mxu0 %vm85_vm1, %v1529_v22  ;;  %1433 = vmatprep.mubr.msk.bf16.mxu1 %vm85_vm1, %v1519_v23 }
  0x2e   :  { %1452 = vmatmul.mubr.msk.bf16.gmra.mrb[20].mxu0 %vm85_vm1, %v1530_v24  ;;  %1434 = vmatmul.mubr.msk.bf16.gmra.mrb[20].mxu1 %vm85_vm1, %v1520_v25 }
  0x2f   :  { %1457 = vmatprep.mubr.msk.bf16.mxu1 %vm85_vm1, %v1521_v26 }
  0x36   :  { %1458 = vmatmul.mubr.msk.bf16.vlgmr.msra.gmra.mrb[24].mxu1 %vm85_vm1, %v1522_v27 }
  0x37   :  { %1461 = vmatprep.mubr.msk.bf16.mxu1 %vm85_vm1, %v1525_v28 }
  0x3e   :  { %1462 = vmatmul.mubr.msk.bf16.gmra.mrb[28].mxu1 %vm85_vm1, %v1526_v29 }
  0x3f   :  { %1465 = vmatprep.mubr.msk.bf16.mxu1 %vm85_vm1, %v1527_v30 }
  0x46   :  { %1466 = vmatmul.mubr.msk.bf16.gmra.mrb[32].mxu1 %vm85_vm1, %v1528_v31 }
  0x47   :  { %1469 = vmatprep.mubr.msk.bf16.mxu1 %vm85_vm1, %v1531_v32 }
  0x4e   :  { %1470 = vmatmul.mubr.msk.bf16.gmra.mrb[36].mxu1 %vm85_vm1, %v1532_v33 }
  0xd9   :  { %v1405_v35 = vpop.f32.mrb[0].mxu0  ;;  %v1413_v36 = vpop.f32.mrb[0].mxu1 }
  0xda   :  { %v157_v37 = vadd.f32 %v1405_v35, %v1707_v34  ;;  %v148_v38 = vpop.f32.mrb[1].mxu0  ;;  %v189_v39 = vadd.f32 %v1413_v36, %v1707_v34  ;;  %v180_v40 = vpop.f32.mrb[1].mxu1 }
  0xdb   :  { %v149_v41 = vadd.f32 %v1707_v34, %v148_v38  ;;  %v1406_v42 = vpop.f32.mrb[2].mxu0  ;;  %v181_v43 = vadd.f32 %v1707_v34, %v180_v40  ;;  %v1414_v44 = vpop.f32.mrb[2].mxu1 }
  0xdc   :  { %v213_v45 = vmax.f32 %v157_v37, 0.0  ;;  %v160_v46 = vadd.f32 %v1406_v42, %v1707_v34  ;;  %v151_v47 = vpop.f32.mrb[3].mxu0  ;;  %v192_v48 = vadd.f32 %v1414_v44, %v1707_v34  ;;  %v183_v49 = vpop.f32.mrb[3].mxu1  ;;  %v221_v54 = vmax.f32 %v189_v39, 0.0 }
  0xdd   :  { %v211_v50 = vmax.f32 %v149_v41, 0.0  ;;  %v152_v51 = vadd.f32 %v1707_v34, %v151_v47  ;;  %v184_v52 = vadd.f32 %v1707_v34, %v183_v49  ;;  %v219_v57 = vmax.f32 %v181_v43, 0.0  ;;  %v1533_v41 = vld [vmem:[%s1950_s3] sm:$0xff]   ;;  %s1534_s3 = smov 8  }
  0xde   :  { %v214_v53 = vmax.f32 %v160_v46, 0.0  ;;  %v222_v55 = vmax.f32 %v192_v48, 0.0  ;;  %1473 = vmatprep.subr.bf16.mxu0 %v1533_v41 }
  0xdf   :  { %v212_v56 = vmax.f32 %v152_v51, 0.0  ;;  %v220_v58 = vmax.f32 %v184_v52, 0.0  ;;  %1474 = vmatpush3.bf16.msra.mxu0 %v1533_v41 }
  0xe0   :  { %v1717_v59 = vpack.c.bf16 %v214_v53, %v213_v45  ;;  %v1719_v60 = vpack.c.bf16 %v222_v55, %v221_v54 }
  0xe1   :  { %v1721_v61 = vpack.c.bf16 %v212_v56, %v211_v50  ;;  %v1409_v62 = vpop.f32.mrb[4].mxu0  ;;  %v1723_v63 = vpack.c.bf16 %v220_v58, %v219_v57  ;;  %v1417_v0 = vpop.f32.mrb[4].mxu1 }
  0xe2   :  { %v173_v1 = vadd.f32 %v1409_v62, %v1707_v34  ;;  %v164_v2 = vpop.f32.mrb[5].mxu0  ;;  %v205_v3 = vadd.f32 %v1417_v0, %v1707_v34  ;;  %v196_v4 = vpop.f32.mrb[5].mxu1 }
  0xe3   :  { %v165_v5 = vadd.f32 %v1707_v34, %v164_v2  ;;  %v1410_v6 = vpop.f32.mrb[6].mxu0  ;;  %v197_v7 = vadd.f32 %v1707_v34, %v196_v4  ;;  %v1418_v8 = vpop.f32.mrb[6].mxu1 }
  0xe4   :  { %v217_v9 = vmax.f32 %v173_v1, 0.0  ;;  %v176_v10 = vadd.f32 %v1410_v6, %v1707_v34  ;;  %v167_v11 = vpop.f32.mrb[7].mxu0  ;;  %v208_v12 = vadd.f32 %v1418_v8, %v1707_v34  ;;  %v199_v13 = vpop.f32.mrb[7].mxu1  ;;  %v225_v18 = vmax.f32 %v205_v3, 0.0 }
  0xe5   :  { %v215_v14 = vmax.f32 %v165_v5, 0.0  ;;  %v168_v15 = vadd.f32 %v1707_v34, %v167_v11  ;;  %v200_v16 = vadd.f32 %v1707_v34, %v199_v13  ;;  %v223_v21 = vmax.f32 %v197_v7, 0.0 }
  0xe6   :  { %v218_v17 = vmax.f32 %v176_v10, 0.0  ;;  %v226_v19 = vmax.f32 %v208_v12, 0.0 }
  0xe7   :  { %v216_v20 = vmax.f32 %v168_v15, 0.0  ;;  %v224_v22 = vmax.f32 %v200_v16, 0.0 }
  0xe8   :  { %v1733_v23 = vpack.c.bf16 %v218_v17, %v217_v9  ;;  %v1735_v24 = vpack.c.bf16 %v226_v19, %v225_v18 }
  0xe9   :  { %v1737_v25 = vpack.c.bf16 %v216_v20, %v215_v14  ;;  %v1441_v26 = vpop.f32.mrb[8].mxu0  ;;  %v1739_v27 = vpack.c.bf16 %v224_v22, %v223_v21  ;;  %v1423_v28 = vpop.f32.mrb[8].mxu1 }
  0xea   :  { %v561_v29 = vadd.f32 %v1441_v26, %v1707_v34  ;;  %v552_v30 = vpop.f32.mrb[9].mxu0  ;;  %v359_v31 = vadd.f32 %v1423_v28, %v1707_v34  ;;  %v350_v32 = vpop.f32.mrb[9].mxu1 }
  0xeb   :  { %v553_v33 = vadd.f32 %v1707_v34, %v552_v30  ;;  %v1442_v35 = vpop.f32.mrb[10].mxu0  ;;  %v351_v37 = vadd.f32 %v1707_v34, %v350_v32  ;;  %v1424_v38 = vpop.f32.mrb[10].mxu1 }
  0xec   :  { %v617_v36 = vmax.f32 %v561_v29, 0.0  ;;  %v564_v39 = vadd.f32 %v1442_v35, %v1707_v34  ;;  %v555_v40 = vpop.f32.mrb[11].mxu0  ;;  %v362_v43 = vadd.f32 %v1424_v38, %v1707_v34  ;;  %v353_v44 = vpop.f32.mrb[11].mxu1  ;;  %v415_v48 = vmax.f32 %v359_v31, 0.0 }
  0xed   :  { %v615_v42 = vmax.f32 %v553_v33, 0.0  ;;  %v556_v45 = vadd.f32 %v1707_v34, %v555_v40  ;;  %v354_v47 = vadd.f32 %v1707_v34, %v353_v44  ;;  %v413_v51 = vmax.f32 %v351_v37, 0.0 }
  0xee   :  { %v618_v46 = vmax.f32 %v564_v39, 0.0  ;;  %v416_v49 = vmax.f32 %v362_v43, 0.0 }
  0xef   :  { %v616_v50 = vmax.f32 %v556_v45, 0.0  ;;  %v414_v52 = vmax.f32 %v354_v47, 0.0 }
  0xf0   :  { %v632_v53 = vpack.c.bf16 %v618_v46, %v617_v36  ;;  %v430_v55 = vpack.c.bf16 %v416_v49, %v415_v48 }
  0xf1   :  { %v631_v54 = vpack.c.bf16 %v616_v50, %v615_v42  ;;  %v1445_v56 = vpop.f32.mrb[12].mxu0  ;;  %v429_v57 = vpack.c.bf16 %v414_v52, %v413_v51  ;;  %v1427_v58 = vpop.f32.mrb[12].mxu1 }
  0xf2   :  { %875 = vrot.lane.b32.xlu1 %v632_v53, %s1534_s3  ;;  %v577_v62 = vadd.f32 %v1445_v56, %v1707_v34  ;;  %v568_v0 = vpop.f32.mrb[13].mxu0  ;;  %v375_v1 = vadd.f32 %v1427_v58, %v1707_v34  ;;  %851 = vrot.lane.b32.xlu0 %v430_v55, %s1535_s8  ;;  %v366_v2 = vpop.f32.mrb[13].mxu1 }
  0xf3   :  { %v569_v3 = vadd.f32 %v1707_v34, %v568_v0  ;;  %v1446_v4 = vpop.f32.mrb[14].mxu0  ;;  %v367_v5 = vadd.f32 %v1707_v34, %v366_v2  ;;  %v1428_v6 = vpop.f32.mrb[14].mxu1 }
  0xf4   :  { %v621_v7 = vmax.f32 %v577_v62, 0.0  ;;  %v580_v8 = vadd.f32 %v1446_v4, %v1707_v34  ;;  %v571_v9 = vpop.f32.mrb[15].mxu0  ;;  %v378_v10 = vadd.f32 %v1428_v6, %v1707_v34  ;;  %v369_v11 = vpop.f32.mrb[15].mxu1  ;;  %v419_v16 = vmax.f32 %v375_v1, 0.0 }
  0xf5   :  { %v619_v12 = vmax.f32 %v569_v3, 0.0  ;;  %v572_v13 = vadd.f32 %v1707_v34, %v571_v9  ;;  %v370_v14 = vadd.f32 %v1707_v34, %v369_v11  ;;  %v417_v19 = vmax.f32 %v367_v5, 0.0 }
  0xf6   :  { %873 = vrot.lane.b32.xlu1 %v631_v54, %s1534_s3  ;;  %v622_v15 = vmax.f32 %v580_v8, 0.0  ;;  %v420_v17 = vmax.f32 %v378_v10, 0.0  ;;  %849 = vrot.lane.b32.xlu0 %v429_v57, %s1535_s8 }
  0xf7   :  { %v620_v18 = vmax.f32 %v572_v13, 0.0  ;;  %v418_v20 = vmax.f32 %v370_v14, 0.0 }
  0xf8   :  { %v634_v21 = vpack.c.bf16 %v622_v15, %v621_v7  ;;  %v432_v22 = vpack.c.bf16 %v420_v17, %v419_v16 }
  0xf9   :  { %v633_v26 = vpack.c.bf16 %v620_v18, %v619_v12  ;;  %v1449_v28 = vpop.f32.mrb[16].mxu0  ;;  %v431_v29 = vpack.c.bf16 %v418_v20, %v417_v19  ;;  %v1431_v30 = vpop.f32.mrb[16].mxu1 }
  0xfa   :  { %v593_v31 = vadd.f32 %v1449_v28, %v1707_v34  ;;  %v584_v32 = vpop.f32.mrb[17].mxu0  ;;  %v391_v33 = vadd.f32 %v1431_v30, %v1707_v34  ;;  %v382_v35 = vpop.f32.mrb[17].mxu1  ;;  %855 = vrot.lane.b32.xlu1 %v432_v22, %s1535_s8 }
  0xfb   :  { %v585_v36 = vadd.f32 %v1707_v34, %v584_v32  ;;  %v1450_v37 = vpop.f32.mrb[18].mxu0  ;;  %v383_v38 = vadd.f32 %v1707_v34, %v382_v35  ;;  %v1432_v39 = vpop.f32.mrb[18].mxu1  ;;  %853 = vrot.lane.b32.xlu0 %v431_v29, %s1535_s8 }
  0xfc   :  { %v625_v40 = vmax.f32 %v593_v31, 0.0  ;;  %v596_v41 = vadd.f32 %v1450_v37, %v1707_v34  ;;  %v587_v42 = vpop.f32.mrb[19].mxu0  ;;  %v394_v43 = vadd.f32 %v1432_v39, %v1707_v34  ;;  %v385_v44 = vpop.f32.mrb[19].mxu1  ;;  %v423_v49 = vmax.f32 %v391_v33, 0.0 }
  0xfd   :  { %v623_v45 = vmax.f32 %v585_v36, 0.0  ;;  %v588_v46 = vadd.f32 %v1707_v34, %v587_v42  ;;  %v386_v47 = vadd.f32 %v1707_v34, %v385_v44  ;;  %v421_v52 = vmax.f32 %v383_v38, 0.0 }
  0xfe   :  { %v626_v48 = vmax.f32 %v596_v41, 0.0  ;;  %v424_v50 = vmax.f32 %v394_v43, 0.0  ;;  %879 = vrot.lane.b32.xlu1 %v634_v21, %s1534_s3 }
  0xff   :  { %v624_v51 = vmax.f32 %v588_v46, 0.0  ;;  %v422_v53 = vmax.f32 %v386_v47, 0.0  ;;  %877 = vrot.lane.b32.xlu0 %v633_v26, %s1534_s3 }
 0x100   :  { %v636_v54 = vpack.c.bf16 %v626_v48, %v625_v40  ;;  %v434_v55 = vpack.c.bf16 %v424_v50, %v423_v49 }
 0x101   :  { %v635_v56 = vpack.c.bf16 %v624_v51, %v623_v45  ;;  %v1453_v57 = vpop.f32.mrb[20].mxu0  ;;  %v433_v58 = vpack.c.bf16 %v422_v53, %v421_v52  ;;  %v1435_v62 = vpop.f32.mrb[20].mxu1 }
 0x102   :  { %v609_v0 = vadd.f32 %v1453_v57, %v1707_v34  ;;  %v600_v1 = vpop.f32.mrb[21].mxu0  ;;  %v407_v2 = vadd.f32 %v1435_v62, %v1707_v34  ;;  %v398_v3 = vpop.f32.mrb[21].mxu1  ;;  %859 = vrot.lane.b32.xlu1 %v434_v55, %s1535_s8 }
 0x103   :  { %v601_v4 = vadd.f32 %v1707_v34, %v600_v1  ;;  %v1454_v5 = vpop.f32.mrb[22].mxu0  ;;  %v399_v6 = vadd.f32 %v1707_v34, %v398_v3  ;;  %v1436_v7 = vpop.f32.mrb[22].mxu1  ;;  %857 = vrot.lane.b32.xlu0 %v433_v58, %s1535_s8 }
 0x104   :  { %v629_v8 = vmax.f32 %v609_v0, 0.0  ;;  %v612_v9 = vadd.f32 %v1454_v5, %v1707_v34  ;;  %v603_v10 = vpop.f32.mrb[23].mxu0  ;;  %v410_v11 = vadd.f32 %v1436_v7, %v1707_v34  ;;  %v401_v12 = vpop.f32.mrb[23].mxu1  ;;  %v427_v17 = vmax.f32 %v407_v2, 0.0 }
 0x105   :  { %v627_v13 = vmax.f32 %v601_v4, 0.0  ;;  %v604_v14 = vadd.f32 %v1707_v34, %v603_v10  ;;  %v402_v15 = vadd.f32 %v1707_v34, %v401_v12  ;;  %v425_v20 = vmax.f32 %v399_v6, 0.0 }
 0x106   :  { %v630_v16 = vmax.f32 %v612_v9, 0.0  ;;  %v428_v18 = vmax.f32 %v410_v11, 0.0 }
 0x107   :  { %v628_v19 = vmax.f32 %v604_v14, 0.0  ;;  %v426_v21 = vmax.f32 %v402_v15, 0.0 }
 0x108   :  { %v1786_v22 = vpack.c.bf16 %v630_v16, %v629_v8  ;;  %v436_v26 = vpack.c.bf16 %v428_v18, %v427_v17 }
 0x109   :  { %v1788_v28 = vpack.c.bf16 %v628_v19, %v627_v13  ;;  %v435_v29 = vpack.c.bf16 %v426_v21, %v425_v20  ;;  %v1459_v30 = vpop.f32.mrb[24].mxu1 }
 0x10a   :  { %v763_v31 = vadd.f32 %v1459_v30, %v1707_v34  ;;  %v754_v32 = vpop.f32.mrb[25].mxu1 }
 0x10b   :  { %v755_v33 = vadd.f32 %v1707_v34, %v754_v32  ;;  %v1460_v35 = vpop.f32.mrb[26].mxu1 }
 0x10c   :  { %v766_v36 = vadd.f32 %v1460_v35, %v1707_v34  ;;  %v757_v37 = vpop.f32.mrb[27].mxu1  ;;  %v819_v39 = vmax.f32 %v763_v31, 0.0 }
 0x10d   :  { %v758_v38 = vadd.f32 %v1707_v34, %v757_v37  ;;  %v817_v41 = vmax.f32 %v755_v33, 0.0 }
 0x10e   :  { %v820_v40 = vmax.f32 %v766_v36, 0.0 }
 0x10f   :  { %v818_v42 = vmax.f32 %v758_v38, 0.0 }
 0x110   :  { %v834_v43 = vpack.c.bf16 %v820_v40, %v819_v39 }
 0x111   :  { %v833_v44 = vpack.c.bf16 %v818_v42, %v817_v41  ;;  %v1463_v45 = vpop.f32.mrb[28].mxu1 }
 0x112   :  { %v779_v46 = vadd.f32 %v1463_v45, %v1707_v34  ;;  %v770_v47 = vpop.f32.mrb[29].mxu1  ;;  %899 = vrot.lane.b32.xlu1 %v834_v43, %s1536_s9 }
 0x113   :  { %v771_v48 = vadd.f32 %v1707_v34, %v770_v47  ;;  %v1464_v49 = vpop.f32.mrb[30].mxu1  ;;  %897 = vrot.lane.b32.xlu0 %v833_v44, %s1536_s9 }
 0x114   :  { %v782_v50 = vadd.f32 %v1464_v49, %v1707_v34  ;;  %v773_v51 = vpop.f32.mrb[31].mxu1  ;;  %v823_v53 = vmax.f32 %v779_v46, 0.0 }
 0x115   :  { %v774_v52 = vadd.f32 %v1707_v34, %v773_v51  ;;  %v821_v57 = vmax.f32 %v771_v48, 0.0 }
 0x116   :  { %v824_v55 = vmax.f32 %v782_v50, 0.0  ;;  %883 = vrot.lane.b32.xlu1 %v636_v54, %s1534_s3 }
 0x117   :  { %v822_v58 = vmax.f32 %v774_v52, 0.0  ;;  %881 = vrot.lane.b32.xlu0 %v635_v56, %s1534_s3 }
 0x118   :  { %v836_v62 = vpack.c.bf16 %v824_v55, %v823_v53 }
 0x119   :  { %v835_v0 = vpack.c.bf16 %v822_v58, %v821_v57  ;;  %v1467_v1 = vpop.f32.mrb[32].mxu1 }
 0x11a   :  { %v795_v2 = vadd.f32 %v1467_v1, %v1707_v34  ;;  %v786_v3 = vpop.f32.mrb[33].mxu1  ;;  %903 = vrot.lane.b32.xlu1 %v836_v62, %s1536_s9 }
 0x11b   :  { %v787_v4 = vadd.f32 %v1707_v34, %v786_v3  ;;  %v1468_v5 = vpop.f32.mrb[34].mxu1  ;;  %901 = vrot.lane.b32.xlu0 %v835_v0, %s1536_s9 }
 0x11c   :  { %v798_v6 = vadd.f32 %v1468_v5, %v1707_v34  ;;  %v789_v54 = vpop.f32.mrb[35].mxu1  ;;  %v827_v8 = vmax.f32 %v795_v2, 0.0 }
 0x11d   :  { %v790_v7 = vadd.f32 %v1707_v34, %v789_v54  ;;  %v825_v9 = vmax.f32 %v787_v4, 0.0 }
 0x11e   :  { %v828_v56 = vmax.f32 %v798_v6, 0.0  ;;  %863 = vrot.lane.b32.xlu1 %v436_v26, %s1535_s8 }
 0x11f   :  { %v826_v10 = vmax.f32 %v790_v7, 0.0  ;;  %861 = vrot.lane.b32.xlu0 %v435_v29, %s1535_s8 }
 0x120   :  { %v838_v11 = vpack.c.bf16 %v828_v56, %v827_v8 }
 0x121   :  { %v837_v12 = vpack.c.bf16 %v826_v10, %v825_v9  ;;  %v1471_v13 = vpop.f32.mrb[36].mxu1 }
 0x122   :  { %v811_v14 = vadd.f32 %v1471_v13, %v1707_v34  ;;  %v802_v15 = vpop.f32.mrb[37].mxu1  ;;  %907 = vrot.lane.b32.xlu1 %v838_v11, %s1536_s9 }
 0x123   :  { %v803_v16 = vadd.f32 %v1707_v34, %v802_v15  ;;  %v1472_v17 = vpop.f32.mrb[38].mxu1  ;;  %905 = vrot.lane.b32.xlu0 %v837_v12, %s1536_s9 }
 0x124   :  { %v814_v18 = vadd.f32 %v1472_v17, %v1707_v34  ;;  %v805_v19 = vpop.f32.mrb[39].mxu1  ;;  %v831_v21 = vmax.f32 %v811_v14, 0.0 }
 0x125   :  { %v806_v20 = vadd.f32 %v1707_v34, %v805_v19  ;;  %v829_v29 = vmax.f32 %v803_v16, 0.0 }
 0x126   :  { %v832_v26 = vmax.f32 %v814_v18, 0.0  ;;  %887 = vrot.lane.b32.xlu1 %v1786_v22, %s1534_s3 }
 0x127   :  { %v830_v30 = vmax.f32 %v806_v20, 0.0  ;;  %885 = vrot.lane.b32.xlu0 %v1788_v28, %s1534_s3 }
 0x128   :  { %v840_v31 = vpack.c.bf16 %v832_v26, %v831_v21 }
 0x129   :  { %v839_v32 = vpack.c.bf16 %v830_v30, %v829_v29 }
 0x12a   :  { %911 = vrot.lane.b32.xlu1 %v840_v31, %s1536_s9 }
 0x12b   :  { %909 = vrot.lane.b32.xlu0 %v839_v32, %s1536_s9 }
 0x164   :  { %v876_v33 = vpop.permute.xlu1 %875  ;;  %v852_v35 = vpop.permute.xlu0 %851 }
 0x165   :  { %v919_v42 = vsel %vm913_vm2, %v1717_v59, %v852_v35 }
 0x166   :  { %v941_v46 = vsel %vm85_vm1, %v919_v42, %v876_v33 }
 0x168   :  { %v874_v36 = vpop.permute.xlu1 %873  ;;  %v850_v34 = vpop.permute.xlu0 %849 }
 0x169   :  { %v916_v28 = vsel %vm913_vm2, %v1721_v61, %v850_v34 }
 0x16a   :  { %v939_v44 = vsel %vm85_vm1, %v916_v28, %v874_v36 }
 0x16c   :  { %v856_v37 = vpop.permute.xlu1 %855 }
 0x16d   :  { %v854_v38 = vpop.permute.xlu0 %853  ;;  %v925_v51 = vsel %vm913_vm2, %v1733_v23, %v856_v37 }
 0x16e   :  { %v922_v59 = vsel %vm913_vm2, %v1737_v25, %v854_v38 }
 0x170   :  { %v880_v39 = vpop.permute.xlu1 %879 }
 0x171   :  { %v878_v40 = vpop.permute.xlu0 %877  ;;  %v945_v55 = vsel %vm85_vm1, %v925_v51, %v880_v39 }
 0x172   :  { %v943_v52 = vsel %vm85_vm1, %v922_v59, %v878_v40 }
 0x174   :  { %v860_v22 = vpop.permute.xlu1 %859 }
 0x175   :  { %v858_v41 = vpop.permute.xlu0 %857  ;;  %v931_v23 = vsel %vm913_vm2, %v1719_v60, %v860_v22 }
 0x176   :  { %v928_v25 = vsel %vm913_vm2, %v1723_v63, %v858_v41 }
 0x184   :  { %v900_v43 = vpop.permute.xlu1 %899 }
 0x185   :  { %v898_v45 = vpop.permute.xlu0 %897  ;;  %v958_v48 = vsel %vm954_vm3, %v941_v46, %v900_v43 }
 0x186   :  { %v956_v47 = vsel %vm954_vm3, %v939_v44, %v898_v45 }
 0x187   :  { %1475 = vmatprep.mubr.msk.bf16.mxu0 %vm986_vm4, %v956_v47 }
 0x188   :  { %v884_v49 = vpop.permute.xlu1 %883  ;;  %1476 = vmatmul.mubr.msk.bf16.vlgmr.msra.gmra.mrb[24].mxu0 %vm986_vm4, %v958_v48 }
 0x189   :  { %v882_v61 = vpop.permute.xlu0 %881  ;;  %v949_v4 = vsel %vm85_vm1, %v931_v23, %v884_v49 }
 0x18a   :  { %v947_v2 = vsel %vm85_vm1, %v928_v25, %v882_v61 }
 0x18c   :  { %v904_v50 = vpop.permute.xlu1 %903 }
 0x18d   :  { %v902_v53 = vpop.permute.xlu0 %901  ;;  %v962_v58 = vsel %vm954_vm3, %v945_v55, %v904_v50 }
 0x18e   :  { %v960_v57 = vsel %vm954_vm3, %v943_v52, %v902_v53 }
 0x18f   :  { %1479 = vmatprep.mubr.msk.bf16.mxu0 %vm986_vm4, %v960_v57 }
 0x190   :  { %v864_v62 = vpop.permute.xlu1 %863  ;;  %1480 = vmatmul.mubr.msk.bf16.gmra.mrb[28].mxu0 %vm986_vm4, %v962_v58 }
 0x191   :  { %v862_v0 = vpop.permute.xlu0 %861  ;;  %v937_v60 = vsel %vm913_vm2, %v1735_v24, %v864_v62 }
 0x192   :  { %v934_v63 = vsel %vm913_vm2, %v1739_v27, %v862_v0  ;;  %v1865_v27 = vld [vmem:[%s1951_s4] ss:$0 sm:$0xff] }
 0x194   :  { %v908_v1 = vpop.permute.xlu1 %907 }
 0x195   :  { %v906_v3 = vpop.permute.xlu0 %905  ;;  %v966_v6 = vsel %vm954_vm3, %v949_v4, %v908_v1 }
 0x196   :  { %v964_v5 = vsel %vm954_vm3, %v947_v2, %v906_v3 }
 0x197   :  { %1483 = vmatprep.mubr.msk.bf16.mxu0 %vm986_vm4, %v964_v5 }
 0x198   :  { %v888_v54 = vpop.permute.xlu1 %887  ;;  %1484 = vmatmul.mubr.msk.bf16.gmra.mrb[32].mxu0 %vm986_vm4, %v966_v6 }
 0x199   :  { %v886_v7 = vpop.permute.xlu0 %885  ;;  %v953_v10 = vsel %vm85_vm1, %v937_v60, %v888_v54 }
 0x19a   :  { %v951_v56 = vsel %vm85_vm1, %v934_v63, %v886_v7 }
 0x19c   :  { %v912_v8 = vpop.permute.xlu1 %911 }
 0x19d   :  { %v910_v9 = vpop.permute.xlu0 %909  ;;  %v970_v12 = vsel %vm954_vm3, %v953_v10, %v912_v8 }
 0x19e   :  { %v968_v11 = vsel %vm954_vm3, %v951_v56, %v910_v9 }
 0x19f   :  { %1487 = vmatprep.mubr.msk.bf16.mxu0 %vm986_vm4, %v968_v11 }
 0x1a0   :  { %1488 = vmatmul.mubr.msk.bf16.gmra.mrb[36].mxu0 %vm986_vm4, %v970_v12 }
 0x25b   :  { %v1477_v13 = vpop.f32.mrb[24].mxu0 }
 0x25c   :  { %v1046_v24 = vadd.f32 %v1477_v13, %v1865_v27  ;;  %v1037_v14 = vpop.f32.mrb[25].mxu0 }
 0x25d   :  { %v1038_v15 = vadd.f32 %v1865_v27, %v1037_v14  ;;  %v1478_v16 = vpop.f32.mrb[26].mxu0 }
 0x25e   :  { %v1102_v17 = vmax.f32 %v1046_v24, 0.0  ;;  %v1049_v18 = vadd.f32 %v1478_v16, %v1865_v27  ;;  %v1040_v19 = vpop.f32.mrb[27].mxu0 }
 0x25f   :  { %v1100_v20 = vmax.f32 %v1038_v15, 0.0  ;;  %v1041_v21 = vadd.f32 %v1865_v27, %v1040_v19 }
 0x260   :  { %v1342_v26 = vpack.c.bf16 %v1102_v17, %v1102_v17  ;;  %v1103_v29 = vmax.f32 %v1049_v18, 0.0 }
 0x261   :  { %v1340_v30 = vpack.c.bf16 %v1100_v20, %v1100_v20  ;;  %v1101_v31 = vmax.f32 %v1041_v21, 0.0 }
 0x262   :  { %1183 = vst.msk [vmem:[%s1952_s5 + $0x8] sm:$0xf] %vm1180_vm5, %v1342_v26  ;;  %v1343_v32 = vpack.c.bf16 %v1103_v29, %v1103_v29 }
 0x263   :  { %1181 = vst.msk [vmem:[%s1952_s5] sm:$0xf] %vm1180_vm5, %v1340_v30  ;;  %v1341_v33 = vpack.c.bf16 %v1101_v31, %v1101_v31  ;;  %v1481_v35 = vpop.f32.mrb[28].mxu0 }
 0x264   :  { %1184 = vst.msk [vmem:[%s1952_s5 + $0xc] sm:$0xf] %vm1180_vm5, %v1343_v32  ;;  %v1062_v36 = vadd.f32 %v1481_v35, %v1865_v27  ;;  %v1053_v34 = vpop.f32.mrb[29].mxu0 }
 0x265   :  { %1182 = vst.msk [vmem:[%s1952_s5 + $0x4] sm:$0xf] %vm1180_vm5, %v1341_v33  ;;  %v1054_v37 = vadd.f32 %v1865_v27, %v1053_v34  ;;  %v1482_v38 = vpop.f32.mrb[30].mxu0 }
 0x266   :  { %v1106_v39 = vmax.f32 %v1062_v36, 0.0  ;;  %v1065_v40 = vadd.f32 %v1482_v38, %v1865_v27  ;;  %v1056_v22 = vpop.f32.mrb[31].mxu0 }
 0x267   :  { %v1104_v41 = vmax.f32 %v1054_v37, 0.0  ;;  %v1057_v28 = vadd.f32 %v1865_v27, %v1056_v22 }
 0x268   :  { %v1346_v42 = vpack.c.bf16 %v1106_v39, %v1106_v39  ;;  %v1107_v43 = vmax.f32 %v1065_v40, 0.0 }
 0x269   :  { %v1344_v44 = vpack.c.bf16 %v1104_v41, %v1104_v41  ;;  %v1105_v45 = vmax.f32 %v1057_v28, 0.0 }
 0x26a   :  { %1187 = vst.msk [vmem:[%s1952_s5 + $0x18] sm:$0xf] %vm1180_vm5, %v1346_v42  ;;  %v1347_v46 = vpack.c.bf16 %v1107_v43, %v1107_v43 }
 0x26b   :  { %1185 = vst.msk [vmem:[%s1952_s5 + $0x10] sm:$0xf] %vm1180_vm5, %v1344_v44  ;;  %v1345_v47 = vpack.c.bf16 %v1105_v45, %v1105_v45  ;;  %v1485_v48 = vpop.f32.mrb[32].mxu0 }
 0x26c   :  { %1188 = vst.msk [vmem:[%s1952_s5 + $0x1c] sm:$0xf] %vm1180_vm5, %v1347_v46  ;;  %v1078_v49 = vadd.f32 %v1485_v48, %v1865_v27  ;;  %v1069_v61 = vpop.f32.mrb[33].mxu0 }
 0x26d   :  { %1186 = vst.msk [vmem:[%s1952_s5 + $0x14] sm:$0xf] %vm1180_vm5, %v1345_v47  ;;  %v1070_v59 = vadd.f32 %v1865_v27, %v1069_v61  ;;  %v1486_v50 = vpop.f32.mrb[34].mxu0 }
 0x26e   :  { %v1110_v51 = vmax.f32 %v1078_v49, 0.0  ;;  %v1081_v52 = vadd.f32 %v1486_v50, %v1865_v27  ;;  %v1072_v53 = vpop.f32.mrb[35].mxu0 }
 0x26f   :  { %v1108_v55 = vmax.f32 %v1070_v59, 0.0  ;;  %v1073_v57 = vadd.f32 %v1865_v27, %v1072_v53 }
 0x270   :  { %v1350_v58 = vpack.c.bf16 %v1110_v51, %v1110_v51  ;;  %v1111_v62 = vmax.f32 %v1081_v52, 0.0 }
 0x271   :  { %v1348_v0 = vpack.c.bf16 %v1108_v55, %v1108_v55  ;;  %v1109_v25 = vmax.f32 %v1073_v57, 0.0 }
 0x272   :  { %1191 = vst.msk [vmem:[%s1952_s5 + $0x28] sm:$0xf] %vm1180_vm5, %v1350_v58  ;;  %v1351_v1 = vpack.c.bf16 %v1111_v62, %v1111_v62 }
 0x273   :  { %1189 = vst.msk [vmem:[%s1952_s5 + $0x20] sm:$0xf] %vm1180_vm5, %v1348_v0  ;;  %v1349_v23 = vpack.c.bf16 %v1109_v25, %v1109_v25  ;;  %v1489_v2 = vpop.f32.mrb[36].mxu0 }
 0x274   :  { %1192 = vst.msk [vmem:[%s1952_s5 + $0x2c] sm:$0xf] %vm1180_vm5, %v1351_v1  ;;  %v1094_v3 = vadd.f32 %v1489_v2, %v1865_v27  ;;  %v1085_v4 = vpop.f32.mrb[37].mxu0 }
 0x275   :  { %1190 = vst.msk [vmem:[%s1952_s5 + $0x24] sm:$0xf] %vm1180_vm5, %v1349_v23  ;;  %v1086_v5 = vadd.f32 %v1865_v27, %v1085_v4  ;;  %v1490_v6 = vpop.f32.mrb[38].mxu0 }
 0x276   :  { %v1114_v54 = vmax.f32 %v1094_v3, 0.0  ;;  %v1097_v7 = vadd.f32 %v1490_v6, %v1865_v27  ;;  %v1088_v63 = vpop.f32.mrb[39].mxu0 }
 0x277   :  { %v1112_v8 = vmax.f32 %v1086_v5, 0.0  ;;  %v1089_v60 = vadd.f32 %v1865_v27, %v1088_v63 }
 0x278   :  { %v1354_v56 = vpack.c.bf16 %v1114_v54, %v1114_v54  ;;  %v1115_v9 = vmax.f32 %v1097_v7, 0.0 }
 0x279   :  { %v1352_v10 = vpack.c.bf16 %v1112_v8, %v1112_v8  ;;  %v1113_v11 = vmax.f32 %v1089_v60, 0.0 }
 0x27a   :  { %1195 = vst.msk [vmem:[%s1952_s5 + $0x38] sm:$0xf] %vm1180_vm5, %v1354_v56  ;;  %v1355_v12 = vpack.c.bf16 %v1115_v9, %v1115_v9 }
 0x27b   :  { %1193 = vst.msk [vmem:[%s1952_s5 + $0x30] sm:$0xf] %vm1180_vm5, %v1352_v10  ;;  %v1353_v13 = vpack.c.bf16 %v1113_v11, %v1113_v11 }
 0x27c   :  { %1196 = vst.msk [vmem:[%s1952_s5 + $0x3c] sm:$0xf] %vm1180_vm5, %v1355_v12 }
 0x27d   :  { %1194 = vst.msk [vmem:[%s1952_s5 + $0x34] sm:$0xf] %vm1180_vm5, %v1353_v13 }

</bundles_post_ra>
